<compile_context>
chip_gen: v7x
topology: tpu7x:2x2x1
jax: 0.10.0
libtpu: 0.0.40
codegen_flags: <defaults>
</compile_context>

<pallas_src>
import jax
import jax.numpy as jnp
from jax.experimental import pallas as pl
from jax.experimental.pallas import tpu as pltpu


def _round_up(x, m):
    return ((x + m - 1) // m) * m


def _cdiv(a, b):
    return -(-a // b)


def critic2_kernel(s_ref, a_ref, w1s_ref, w1a_ref, b1_ref,
                   w2_ref, b2_ref, w3_ref, b3_ref, out_ref):
    """One (critic, batch-tile) step of relu(relu([s,a]@W1+b1)@W2+b2)@W3+b3.

    Weight/bias refs carry a leading per-critic axis of block-size 1.  MXU
    operands use the packed weight dtype (bf16 by default); accumulation and
    biases are f32.
    """
    cdt = w1s_ref.dtype
    s = s_ref[...].astype(cdt)
    a = a_ref[...].astype(cdt)
    # Layer 1 (concat fused: W1 split into state rows / action rows).
    h = (jnp.dot(s, w1s_ref[0], preferred_element_type=jnp.float32)
         + jnp.dot(a, w1a_ref[0], preferred_element_type=jnp.float32)
         + b1_ref[0])
    h = jnp.maximum(h, 0.0).astype(cdt)
    # Layer 2.
    h = jnp.dot(h, w2_ref[0], preferred_element_type=jnp.float32) + b2_ref[0]
    h = jnp.maximum(h, 0.0).astype(cdt)
    # Layer 3 (no activation).
    out_ref[0] = (jnp.dot(h, w3_ref[0], preferred_element_type=jnp.float32)
                  + b3_ref[0])


def pack_critic2_params(critic_params_list, obs_dim, act_dim,
                        weight_dtype=jnp.bfloat16):
    """One-time packing of one or more critics' parameters.

    critic_params_list: sequence of (w1, b1, w2, b2, w3, b3) with weights
    stored (in_features, out_features).  Per critic: W1 is split by input
    source (state rows / action rows) and hidden / output feature dims are
    zero-padded up to multiples of 128 (lane-dense).  Weights are cast to
    `weight_dtype` (bf16 by default); biases stay f32.  All critics are
    stacked along a leading axis C so SAC's twin critics can be fused into a
    single pallas_call.
    """
    w1_0, _, _, _, w3_0, _ = critic_params_list[0]
    H = w1_0.shape[1]
    A = w3_0.shape[1]
    Hp = _round_up(H, 128)
    Ap = _round_up(A, 128)

    def pad2(x, rows, cols, dtype):
        x = x.astype(dtype)
        return jnp.pad(x, ((0, rows - x.shape[0]), (0, cols - x.shape[1])))

    def pack_one(p):
        w1, b1, w2, b2, w3, b3 = p
        return (pad2(w1[:obs_dim], obs_dim, Hp, weight_dtype),   # W1_state
                pad2(w1[obs_dim:], act_dim, Hp, weight_dtype),   # W1_action
                pad2(b1, 1, Hp, jnp.float32),
                pad2(w2, Hp, Hp, weight_dtype),
                pad2(b2, 1, Hp, jnp.float32),
                pad2(w3, Hp, Ap, weight_dtype),
                pad2(b3, 1, Ap, jnp.float32))

    per_critic = [pack_one(p) for p in critic_params_list]
    packed = tuple(jnp.stack(arrs, axis=0) for arrs in zip(*per_critic))
    return packed, (H, A, Hp, Ap)


def critic2_forward(state, action, packed, dims):
    """Fused forward for C stacked critics -> (C, B, act_dim) Q-values.

    C == 1 reproduces the PyTorch Critic2.forward; C == 2 fuses SAC's twin
    critics into one launch.
    """
    H, A, Hp, Ap = dims
    w1s, w1a, b1, w2, b2, w3, b3 = packed
    C = w1s.shape[0]
    w_bytes = jnp.dtype(w1s.dtype).itemsize

    state = state.astype(jnp.float32)
    action = action.astype(jnp.float32)
    B, obs_dim = state.shape
    act_dim = action.shape[1]
    d_in = obs_dim + act_dim

    # --- batch tiling -------------------------------------------------------
    # >= 2 (even) grid steps whenever B >= 16 so the parallel batch axis can
    # actually be split across v7x's two TensorCores; tile size adapts to B.
    B8 = _round_up(B, 8)
    if B8 >= 16:
        n_tiles = max(2, _cdiv(B8, 512))
        n_tiles += n_tiles % 2
    else:
        n_tiles = 1
    tile_b = _round_up(_cdiv(B8, n_tiles), 8)
    B_pad = tile_b * n_tiles
    if B_pad != B:
        state = jnp.pad(state, ((0, B_pad - B), (0, 0)))
        action = jnp.pad(action, ((0, B_pad - B), (0, 0)))

    def build_and_run(single_buffer_weights):
        if single_buffer_weights:
            # Stationary operands: a single VMEM copy (they only change on
            # the short, outer critic axis), not default double-buffering.
            stat_kwargs = dict(pipeline_mode=pl.Buffered(1))
            weight_bufs = 1
        else:
            stat_kwargs = {}
            weight_bufs = 2

        def stationary(shape):
            return pl.BlockSpec(shape, lambda c, i: (c, 0, 0), **stat_kwargs)

        def batched(shape):
            return pl.BlockSpec(shape, lambda c, i: (i, 0))

        # TODO(synk): for hidden_dim >= ~2048 with f32 weights, add a K-tiled
        # reduction grid axis over Hp for the layer-2 matmul instead of one
        # resident W2 block (matters on v7x's 64 MiB per-core VMEM).
        in_specs = [
            batched((tile_b, obs_dim)),        # state
            batched((tile_b, act_dim)),        # action
            stationary((1, obs_dim, Hp)),      # W1_state
            stationary((1, act_dim, Hp)),      # W1_action
            stationary((1, 1, Hp)),            # b1
            stationary((1, Hp, Hp)),           # W2
            stationary((1, 1, Hp)),            # b2
            stationary((1, Hp, Ap)),           # W3
            stationary((1, 1, Ap)),            # b3
        ]
        out_specs = pl.BlockSpec((1, tile_b, Ap), lambda c, i: (c, i, 0))

        # --- VMEM budget (per core): weights (x buffer count) + double-
        # buffered activation tiles + h1/h2 intermediates + headroom. ---
        weight_vmem = weight_bufs * w_bytes * (
            obs_dim * Hp + act_dim * Hp + Hp * Hp + Hp * Ap)
        bias_vmem = weight_bufs * 4 * (2 * Hp + Ap)
        io_vmem = 2 * 4 * tile_b * (obs_dim + act_dim + Ap)
        interm_vmem = (2 * 4 + w_bytes) * tile_b * Hp
        needed = weight_vmem + bias_vmem + io_vmem + interm_vmem + (4 << 20)

        vmem_cap = 64 << 20                    # v7x per-TC worst case
        try:
            vmem_cap = int(getattr(pltpu.get_tpu_info(),
                                   "vmem_capacity_bytes", vmem_cap))
        except Exception:
            pass
        vmem_limit = int(min(max(needed, 16 << 20), vmem_cap - (8 << 20)))

        flops = 2 * C * B_pad * (d_in * Hp + Hp * Hp + Hp * Ap)
        bytes_accessed = int(
            C * 4 * B_pad * (d_in + Ap)
            + C * (w_bytes * (d_in * Hp + Hp * Hp + Hp * Ap)
                   + 4 * (2 * Hp + Ap)))

        return pl.pallas_call(
            critic2_kernel,
            out_shape=jax.ShapeDtypeStruct((C, B_pad, Ap), jnp.float32),
            grid=(C, n_tiles),
            in_specs=in_specs,
            out_specs=out_specs,
            compiler_params=pltpu.CompilerParams(
                dimension_semantics=("parallel", "parallel"),
                vmem_limit_bytes=vmem_limit),
            cost_estimate=pl.CostEstimate(
                flops=flops, transcendentals=0,
                bytes_accessed=bytes_accessed),
        )(state, action, w1s, w1a, b1, w2, b2, w3, b3)

    try:
        out_padded = build_and_run(single_buffer_weights=True)
    except Exception:
        # Fallback for JAX versions without BlockSpec.pipeline_mode /
        # pl.Buffered; any genuine failure re-raises from the retry.
        out_padded = build_and_run(single_buffer_weights=False)

    return out_padded[:, :B, :A]


def init_critic2_params(key, obs_dim, act_dim, hidden_dim):
    """Deterministic init matching nn.Linear (U(-1/sqrt(fan_in), +)),
    stored as (in_features, out_features) so the kernel computes x @ W + b."""
    d_in = obs_dim + act_dim
    ks = jax.random.split(key, 6)

    def lin(kw, kb, fan_in, fan_out):
        bound = 1.0 / jnp.sqrt(jnp.float32(fan_in))
        w = jax.random.uniform(kw, (fan_in, fan_out), jnp.float32, -bound, bound)
        b = jax.random.uniform(kb, (1, fan_out), jnp.float32, -bound, bound)
        return w, b

    w1, b1 = lin(ks[0], ks[1], d_in, hidden_dim)
    w2, b2 = lin(ks[2], ks[3], hidden_dim, hidden_dim)
    w3, b3 = lin(ks[4], ks[5], hidden_dim, act_dim)
    return (w1, b1, w2, b2, w3, b3)


if __name__ == "__main__":
    key = jax.random.PRNGKey(0)
    k_state, k_action, k_p1, k_p2 = jax.random.split(key, 4)

    # Small synthetic env: obs_dim=16, act_dim=4, hidden_dim=32, batch=8.
    B, OBS, ACT, HID = 8, 16, 4, 32
    state = jax.random.normal(k_state, (B, OBS), jnp.float32)
    action = jax.random.normal(k_action, (B, ACT), jnp.float32)

    params1 = init_critic2_params(k_p1, OBS, ACT, HID)
    params2 = init_critic2_params(k_p2, OBS, ACT, HID)

    # Pure-JAX reference of the PyTorch Critic2.forward semantics.
    def ref_forward(p, s, a):
        w1, b1, w2, b2, w3, b3 = p
        q = jnp.concatenate([s, a], axis=1)
        h = jnp.maximum(q @ w1 + b1, 0.0)
        h = jnp.maximum(h @ w2 + b2, 0.0)
        return h @ w3 + b3

    ref1 = ref_forward(params1, state, action)
    ref2 = ref_forward(params2, state, action)

    # (a) f32-weight path: exact numerics of the module (single critic).
    packed_f32, dims = pack_critic2_params([params1], OBS, ACT,
                                           weight_dtype=jnp.float32)
    q_f32 = critic2_forward(state, action, packed_f32, dims)
    jax.block_until_ready(q_f32)
    assert q_f32.shape == (1, B, ACT)
    assert jnp.allclose(q_f32[0], ref1, atol=1e-5, rtol=1e-5)

    # (b) bf16-weight path (default) with twin-critic fusion in one launch.
    packed_bf16, dims = pack_critic2_params([params1, params2], OBS, ACT)
    q_twin = critic2_forward(state, action, packed_bf16, dims)
    jax.block_until_ready(q_twin)
    assert q_twin.shape == (2, B, ACT)
    assert jnp.allclose(q_twin[0], ref1, atol=7e-2, rtol=7e-2)
    assert jnp.allclose(q_twin[1], ref2, atol=7e-2, rtol=7e-2)

    print("KERNEL_OK")
</pallas_src>

<mosaic_0001>
module attributes {stable_mosaic.version = 11 : i64} {
  func.func @critic2_kernel(%arg0: i32, %arg1: i32, %arg2: memref<8x16xf32, #tpu.memory_space<vmem>>, %arg3: memref<8x4xf32, #tpu.memory_space<vmem>>, %arg4: memref<1x16x128xf32, #tpu.memory_space<vmem>>, %arg5: memref<1x4x128xf32, #tpu.memory_space<vmem>>, %arg6: memref<1x1x128xf32, #tpu.memory_space<vmem>>, %arg7: memref<1x128x128xf32, #tpu.memory_space<vmem>>, %arg8: memref<1x1x128xf32, #tpu.memory_space<vmem>>, %arg9: memref<1x128x128xf32, #tpu.memory_space<vmem>>, %arg10: memref<1x1x128xf32, #tpu.memory_space<vmem>>, %arg11: memref<1x8x128xf32, #tpu.memory_space<vmem>>) attributes {dimension_semantics = [#tpu.dimension_semantics<parallel>, #tpu.dimension_semantics<parallel>], iteration_bounds = array<i64: 1, 1>, scalar_prefetch = 0 : i64, scratch_operands = 0 : i64, tpu.core_type = #tpu.core_type<tc>, window_params = [{transform_indices = @transform_0, window_bounds = array<i64: 8, 16>}, {transform_indices = @transform_1, window_bounds = array<i64: 8, 4>}, {pipeline_mode = #tpu.pipeline_mode<synchronous>, transform_indices = @transform_2, window_bounds = array<i64: 1, 16, 128>}, {pipeline_mode = #tpu.pipeline_mode<synchronous>, transform_indices = @transform_3, window_bounds = array<i64: 1, 4, 128>}, {pipeline_mode = #tpu.pipeline_mode<synchronous>, transform_indices = @transform_4, window_bounds = array<i64: 1, 1, 128>}, {pipeline_mode = #tpu.pipeline_mode<synchronous>, transform_indices = @transform_5, window_bounds = array<i64: 1, 128, 128>}, {pipeline_mode = #tpu.pipeline_mode<synchronous>, transform_indices = @transform_6, window_bounds = array<i64: 1, 1, 128>}, {pipeline_mode = #tpu.pipeline_mode<synchronous>, transform_indices = @transform_7, window_bounds = array<i64: 1, 128, 128>}, {pipeline_mode = #tpu.pipeline_mode<synchronous>, transform_indices = @transform_8, window_bounds = array<i64: 1, 1, 128>}, {transform_indices = @transform_9, window_bounds = array<i64: 1, 8, 128>}]} {
    %c0 = arith.constant 0 : index
    %c0_0 = arith.constant 0 : index
    %0 = vector.load %arg2[%c0, %c0_0] : memref<8x16xf32, #tpu.memory_space<vmem>>, vector<8x16xf32>
    %c0_1 = arith.constant 0 : index
    %c0_2 = arith.constant 0 : index
    %1 = vector.load %arg3[%c0_1, %c0_2] : memref<8x4xf32, #tpu.memory_space<vmem>>, vector<8x4xf32>
    %c0_3 = arith.constant 0 : index
    %c0_4 = arith.constant 0 : index
    %c0_5 = arith.constant 0 : index
    %2 = vector.load %arg4[%c0_3, %c0_4, %c0_5] : memref<1x16x128xf32, #tpu.memory_space<vmem>>, vector<1x16x128xf32>
    %3 = vector.shape_cast %2 : vector<1x16x128xf32> to vector<16x128xf32>
    %cst = arith.constant dense<0.000000e+00> : vector<8x128xf32>
    %4 = tpu.matmul %0, %3, %cst {dimension_numbers = #tpu.dot_dimension_numbers<[1], [0], [0], [1], [0, 0, 1, 1], [], []>} : vector<8x16xf32>, vector<16x128xf32>, vector<8x128xf32> -> vector<8x128xf32>
    %c0_6 = arith.constant 0 : index
    %c0_7 = arith.constant 0 : index
    %c0_8 = arith.constant 0 : index
    %5 = vector.load %arg5[%c0_6, %c0_7, %c0_8] : memref<1x4x128xf32, #tpu.memory_space<vmem>>, vector<1x4x128xf32>
    %6 = vector.shape_cast %5 : vector<1x4x128xf32> to vector<4x128xf32>
    %cst_9 = arith.constant dense<0.000000e+00> : vector<8x128xf32>
    %7 = tpu.matmul %1, %6, %cst_9 {dimension_numbers = #tpu.dot_dimension_numbers<[1], [0], [0], [1], [0, 0, 1, 1], [], []>} : vector<8x4xf32>, vector<4x128xf32>, vector<8x128xf32> -> vector<8x128xf32>
    %8 = arith.addf %4, %7 : vector<8x128xf32>
    %c0_10 = arith.constant 0 : index
    %c0_11 = arith.constant 0 : index
    %c0_12 = arith.constant 0 : index
    %9 = vector.load %arg6[%c0_10, %c0_11, %c0_12] : memref<1x1x128xf32, #tpu.memory_space<vmem>>, vector<1x1x128xf32>
    %10 = vector.shape_cast %9 : vector<1x1x128xf32> to vector<1x128xf32>
    %11 = vector.broadcast %10 : vector<1x128xf32> to vector<8x128xf32>
    %12 = arith.addf %8, %11 : vector<8x128xf32>
    %cst_13 = arith.constant 0.000000e+00 : f32
    %13 = vector.broadcast %cst_13 : f32 to vector<8x128xf32>
    %14 = arith.maximumf %12, %13 : vector<8x128xf32>
    %c0_14 = arith.constant 0 : index
    %c0_15 = arith.constant 0 : index
    %c0_16 = arith.constant 0 : index
    %15 = vector.load %arg7[%c0_14, %c0_15, %c0_16] : memref<1x128x128xf32, #tpu.memory_space<vmem>>, vector<1x128x128xf32>
    %16 = vector.shape_cast %15 : vector<1x128x128xf32> to vector<128x128xf32>
    %cst_17 = arith.constant dense<0.000000e+00> : vector<8x128xf32>
    %17 = tpu.matmul %14, %16, %cst_17 {dimension_numbers = #tpu.dot_dimension_numbers<[1], [0], [0], [1], [0, 0, 1, 1], [], []>} : vector<8x128xf32>, vector<128x128xf32>, vector<8x128xf32> -> vector<8x128xf32>
    %c0_18 = arith.constant 0 : index
    %c0_19 = arith.constant 0 : index
    %c0_20 = arith.constant 0 : index
    %18 = vector.load %arg8[%c0_18, %c0_19, %c0_20] : memref<1x1x128xf32, #tpu.memory_space<vmem>>, vector<1x1x128xf32>
    %19 = vector.shape_cast %18 : vector<1x1x128xf32> to vector<1x128xf32>
    %20 = vector.broadcast %19 : vector<1x128xf32> to vector<8x128xf32>
    %21 = arith.addf %17, %20 : vector<8x128xf32>
    %cst_21 = arith.constant 0.000000e+00 : f32
    %22 = vector.broadcast %cst_21 : f32 to vector<8x128xf32>
    %23 = arith.maximumf %21, %22 : vector<8x128xf32>
    %c0_22 = arith.constant 0 : index
    %c0_23 = arith.constant 0 : index
    %c0_24 = arith.constant 0 : index
    %24 = vector.load %arg9[%c0_22, %c0_23, %c0_24] : memref<1x128x128xf32, #tpu.memory_space<vmem>>, vector<1x128x128xf32>
    %25 = vector.shape_cast %24 : vector<1x128x128xf32> to vector<128x128xf32>
    %cst_25 = arith.constant dense<0.000000e+00> : vector<8x128xf32>
    %26 = tpu.matmul %23, %25, %cst_25 {dimension_numbers = #tpu.dot_dimension_numbers<[1], [0], [0], [1], [0, 0, 1, 1], [], []>} : vector<8x128xf32>, vector<128x128xf32>, vector<8x128xf32> -> vector<8x128xf32>
    %c0_26 = arith.constant 0 : index
    %c0_27 = arith.constant 0 : index
    %c0_28 = arith.constant 0 : index
    %27 = vector.load %arg10[%c0_26, %c0_27, %c0_28] : memref<1x1x128xf32, #tpu.memory_space<vmem>>, vector<1x1x128xf32>
    %28 = vector.shape_cast %27 : vector<1x1x128xf32> to vector<1x128xf32>
    %29 = vector.broadcast %28 : vector<1x128xf32> to vector<8x128xf32>
    %30 = arith.addf %26, %29 : vector<8x128xf32>
    %c0_29 = arith.constant 0 : index
    %c0_30 = arith.constant 0 : index
    %c0_31 = arith.constant 0 : index
    %31 = vector.load %arg11[%c0_29, %c0_30, %c0_31] : memref<1x8x128xf32, #tpu.memory_space<vmem>>, vector<1x8x128xf32>
    %32 = vector.shape_cast %31 : vector<1x8x128xf32> to vector<8x128xf32>
    %33 = vector.shape_cast %30 : vector<8x128xf32> to vector<1x8x128xf32>
    tpu.vector_store %arg11[%c0_29, %c0_30, %c0_31], %33 {strides = array<i32>} : memref<1x8x128xf32, #tpu.memory_space<vmem>>, vector<1x8x128xf32>,
    return
  }
  func.func @transform_0(%arg0: i32, %arg1: i32) -> (i32, i32) {
    %c0_i32 = arith.constant 0 : i32
    %c0_i32_0 = arith.constant 0 : i32
    return %arg1, %c0_i32 : i32, i32
  }
  func.func @transform_1(%arg0: i32, %arg1: i32) -> (i32, i32) {
    %c0_i32 = arith.constant 0 : i32
    %c0_i32_0 = arith.constant 0 : i32
    return %arg1, %c0_i32 : i32, i32
  }
  func.func @transform_2(%arg0: i32, %arg1: i32) -> (i32, i32, i32) {
    %c0_i32 = arith.constant 0 : i32
    %c0_i32_0 = arith.constant 0 : i32
    %c0_i32_1 = arith.constant 0 : i32
    return %arg0, %c0_i32, %c0_i32_0 : i32, i32, i32
  }
  func.func @transform_3(%arg0: i32, %arg1: i32) -> (i32, i32, i32) {
    %c0_i32 = arith.constant 0 : i32
    %c0_i32_0 = arith.constant 0 : i32
    %c0_i32_1 = arith.constant 0 : i32
    return %arg0, %c0_i32, %c0_i32_0 : i32, i32, i32
  }
  func.func @transform_4(%arg0: i32, %arg1: i32) -> (i32, i32, i32) {
    %c0_i32 = arith.constant 0 : i32
    %c0_i32_0 = arith.constant 0 : i32
    %c0_i32_1 = arith.constant 0 : i32
    return %arg0, %c0_i32, %c0_i32_0 : i32, i32, i32
  }
  func.func @transform_5(%arg0: i32, %arg1: i32) -> (i32, i32, i32) {
    %c0_i32 = arith.constant 0 : i32
    %c0_i32_0 = arith.constant 0 : i32
    %c0_i32_1 = arith.constant 0 : i32
    return %arg0, %c0_i32, %c0_i32_0 : i32, i32, i32
  }
  func.func @transform_6(%arg0: i32, %arg1: i32) -> (i32, i32, i32) {
    %c0_i32 = arith.constant 0 : i32
    %c0_i32_0 = arith.constant 0 : i32
    %c0_i32_1 = arith.constant 0 : i32
    return %arg0, %c0_i32, %c0_i32_0 : i32, i32, i32
  }
  func.func @transform_7(%arg0: i32, %arg1: i32) -> (i32, i32, i32) {
    %c0_i32 = arith.constant 0 : i32
    %c0_i32_0 = arith.constant 0 : i32
    %c0_i32_1 = arith.constant 0 : i32
    return %arg0, %c0_i32, %c0_i32_0 : i32, i32, i32
  }
  func.func @transform_8(%arg0: i32, %arg1: i32) -> (i32, i32, i32) {
    %c0_i32 = arith.constant 0 : i32
    %c0_i32_0 = arith.constant 0 : i32
    %c0_i32_1 = arith.constant 0 : i32
    return %arg0, %c0_i32, %c0_i32_0 : i32, i32, i32
  }
  func.func @transform_9(%arg0: i32, %arg1: i32) -> (i32, i32, i32) {
    %c0_i32 = arith.constant 0 : i32
    %c0_i32_0 = arith.constant 0 : i32
    return %arg0, %arg1, %c0_i32 : i32, i32, i32
  }
}

module attributes {stable_mosaic.version = 11 : i64} {
  func.func @critic2_kernel(%arg0: i32, %arg1: i32, %arg2: memref<8x16xf32, #tpu.memory_space<vmem>>, %arg3: memref<8x4xf32, #tpu.memory_space<vmem>>, %arg4: memref<1x16x128xf32, #tpu.memory_space<vmem>>, %arg5: memref<1x4x128xf32, #tpu.memory_space<vmem>>, %arg6: memref<1x1x128xf32, #tpu.memory_space<vmem>>, %arg7: memref<1x128x128xf32, #tpu.memory_space<vmem>>, %arg8: memref<1x1x128xf32, #tpu.memory_space<vmem>>, %arg9: memref<1x128x128xf32, #tpu.memory_space<vmem>>, %arg10: memref<1x1x128xf32, #tpu.memory_space<vmem>>, %arg11: memref<1x8x128xf32, #tpu.memory_space<vmem>>) attributes {dimension_semantics = [#tpu.dimension_semantics<parallel>, #tpu.dimension_semantics<parallel>], iteration_bounds = array<i64: 1, 1>, scalar_prefetch = 0 : i64, scratch_operands = 0 : i64, tpu.core_type = #tpu.core_type<tc>, window_params = [{transform_indices = @transform_0, window_bounds = array<i64: 8, 16>}, {transform_indices = @transform_1, window_bounds = array<i64: 8, 4>}, {transform_indices = @transform_2, window_bounds = array<i64: 1, 16, 128>}, {transform_indices = @transform_3, window_bounds = array<i64: 1, 4, 128>}, {transform_indices = @transform_4, window_bounds = array<i64: 1, 1, 128>}, {transform_indices = @transform_5, window_bounds = array<i64: 1, 128, 128>}, {transform_indices = @transform_6, window_bounds = array<i64: 1, 1, 128>}, {transform_indices = @transform_7, window_bounds = array<i64: 1, 128, 128>}, {transform_indices = @transform_8, window_bounds = array<i64: 1, 1, 128>}, {transform_indices = @transform_9, window_bounds = array<i64: 1, 8, 128>}]} {
    %c0 = arith.constant 0 : index
    %c0_0 = arith.constant 0 : index
    %0 = vector.load %arg2[%c0, %c0_0] : memref<8x16xf32, #tpu.memory_space<vmem>>, vector<8x16xf32>
    %c0_1 = arith.constant 0 : index
    %c0_2 = arith.constant 0 : index
    %1 = vector.load %arg3[%c0_1, %c0_2] : memref<8x4xf32, #tpu.memory_space<vmem>>, vector<8x4xf32>
    %c0_3 = arith.constant 0 : index
    %c0_4 = arith.constant 0 : index
    %c0_5 = arith.constant 0 : index
    %2 = vector.load %arg4[%c0_3, %c0_4, %c0_5] : memref<1x16x128xf32, #tpu.memory_space<vmem>>, vector<1x16x128xf32>
    %3 = vector.shape_cast %2 : vector<1x16x128xf32> to vector<16x128xf32>
    %cst = arith.constant dense<0.000000e+00> : vector<8x128xf32>
    %4 = tpu.matmul %0, %3, %cst {dimension_numbers = #tpu.dot_dimension_numbers<[1], [0], [0], [1], [0, 0, 1, 1], [], []>} : vector<8x16xf32>, vector<16x128xf32>, vector<8x128xf32> -> vector<8x128xf32>
    %c0_6 = arith.constant 0 : index
    %c0_7 = arith.constant 0 : index
    %c0_8 = arith.constant 0 : index
    %5 = vector.load %arg5[%c0_6, %c0_7, %c0_8] : memref<1x4x128xf32, #tpu.memory_space<vmem>>, vector<1x4x128xf32>
    %6 = vector.shape_cast %5 : vector<1x4x128xf32> to vector<4x128xf32>
    %cst_9 = arith.constant dense<0.000000e+00> : vector<8x128xf32>
    %7 = tpu.matmul %1, %6, %cst_9 {dimension_numbers = #tpu.dot_dimension_numbers<[1], [0], [0], [1], [0, 0, 1, 1], [], []>} : vector<8x4xf32>, vector<4x128xf32>, vector<8x128xf32> -> vector<8x128xf32>
    %8 = arith.addf %4, %7 : vector<8x128xf32>
    %c0_10 = arith.constant 0 : index
    %c0_11 = arith.constant 0 : index
    %c0_12 = arith.constant 0 : index
    %9 = vector.load %arg6[%c0_10, %c0_11, %c0_12] : memref<1x1x128xf32, #tpu.memory_space<vmem>>, vector<1x1x128xf32>
    %10 = vector.shape_cast %9 : vector<1x1x128xf32> to vector<1x128xf32>
    %11 = vector.broadcast %10 : vector<1x128xf32> to vector<8x128xf32>
    %12 = arith.addf %8, %11 : vector<8x128xf32>
    %cst_13 = arith.constant 0.000000e+00 : f32
    %13 = vector.broadcast %cst_13 : f32 to vector<8x128xf32>
    %14 = arith.maximumf %12, %13 : vector<8x128xf32>
    %c0_14 = arith.constant 0 : index
    %c0_15 = arith.constant 0 : index
    %c0_16 = arith.constant 0 : index
    %15 = vector.load %arg7[%c0_14, %c0_15, %c0_16] : memref<1x128x128xf32, #tpu.memory_space<vmem>>, vector<1x128x128xf32>
    %16 = vector.shape_cast %15 : vector<1x128x128xf32> to vector<128x128xf32>
    %cst_17 = arith.constant dense<0.000000e+00> : vector<8x128xf32>
    %17 = tpu.matmul %14, %16, %cst_17 {dimension_numbers = #tpu.dot_dimension_numbers<[1], [0], [0], [1], [0, 0, 1, 1], [], []>} : vector<8x128xf32>, vector<128x128xf32>, vector<8x128xf32> -> vector<8x128xf32>
    %c0_18 = arith.constant 0 : index
    %c0_19 = arith.constant 0 : index
    %c0_20 = arith.constant 0 : index
    %18 = vector.load %arg8[%c0_18, %c0_19, %c0_20] : memref<1x1x128xf32, #tpu.memory_space<vmem>>, vector<1x1x128xf32>
    %19 = vector.shape_cast %18 : vector<1x1x128xf32> to vector<1x128xf32>
    %20 = vector.broadcast %19 : vector<1x128xf32> to vector<8x128xf32>
    %21 = arith.addf %17, %20 : vector<8x128xf32>
    %cst_21 = arith.constant 0.000000e+00 : f32
    %22 = vector.broadcast %cst_21 : f32 to vector<8x128xf32>
    %23 = arith.maximumf %21, %22 : vector<8x128xf32>
    %c0_22 = arith.constant 0 : index
    %c0_23 = arith.constant 0 : index
    %c0_24 = arith.constant 0 : index
    %24 = vector.load %arg9[%c0_22, %c0_23, %c0_24] : memref<1x128x128xf32, #tpu.memory_space<vmem>>, vector<1x128x128xf32>
    %25 = vector.shape_cast %24 : vector<1x128x128xf32> to vector<128x128xf32>
    %cst_25 = arith.constant dense<0.000000e+00> : vector<8x128xf32>
    %26 = tpu.matmul %23, %25, %cst_25 {dimension_numbers = #tpu.dot_dimension_numbers<[1], [0], [0], [1], [0, 0, 1, 1], [], []>} : vector<8x128xf32>, vector<128x128xf32>, vector<8x128xf32> -> vector<8x128xf32>
    %c0_26 = arith.constant 0 : index
    %c0_27 = arith.constant 0 : index
    %c0_28 = arith.constant 0 : index
    %27 = vector.load %arg10[%c0_26, %c0_27, %c0_28] : memref<1x1x128xf32, #tpu.memory_space<vmem>>, vector<1x1x128xf32>
    %28 = vector.shape_cast %27 : vector<1x1x128xf32> to vector<1x128xf32>
    %29 = vector.broadcast %28 : vector<1x128xf32> to vector<8x128xf32>
    %30 = arith.addf %26, %29 : vector<8x128xf32>
    %c0_29 = arith.constant 0 : index
    %c0_30 = arith.constant 0 : index
    %c0_31 = arith.constant 0 : index
    %31 = vector.load %arg11[%c0_29, %c0_30, %c0_31] : memref<1x8x128xf32, #tpu.memory_space<vmem>>, vector<1x8x128xf32>
    %32 = vector.shape_cast %31 : vector<1x8x128xf32> to vector<8x128xf32>
    %33 = vector.shape_cast %30 : vector<8x128xf32> to vector<1x8x128xf32>
    tpu.vector_store %arg11[%c0_29, %c0_30, %c0_31], %33 {strides = array<i32>} : memref<1x8x128xf32, #tpu.memory_space<vmem>>, vector<1x8x128xf32>,
    return
  }
  func.func @transform_0(%arg0: i32, %arg1: i32) -> (i32, i32) {
    %c0_i32 = arith.constant 0 : i32
    %c0_i32_0 = arith.constant 0 : i32
    return %arg1, %c0_i32 : i32, i32
  }
  func.func @transform_1(%arg0: i32, %arg1: i32) -> (i32, i32) {
    %c0_i32 = arith.constant 0 : i32
    %c0_i32_0 = arith.constant 0 : i32
    return %arg1, %c0_i32 : i32, i32
  }
  func.func @transform_2(%arg0: i32, %arg1: i32) -> (i32, i32, i32) {
    %c0_i32 = arith.constant 0 : i32
    %c0_i32_0 = arith.constant 0 : i32
    %c0_i32_1 = arith.constant 0 : i32
    return %arg0, %c0_i32, %c0_i32_0 : i32, i32, i32
  }
  func.func @transform_3(%arg0: i32, %arg1: i32) -> (i32, i32, i32) {
    %c0_i32 = arith.constant 0 : i32
    %c0_i32_0 = arith.constant 0 : i32
    %c0_i32_1 = arith.constant 0 : i32
    return %arg0, %c0_i32, %c0_i32_0 : i32, i32, i32
  }
  func.func @transform_4(%arg0: i32, %arg1: i32) -> (i32, i32, i32) {
    %c0_i32 = arith.constant 0 : i32
    %c0_i32_0 = arith.constant 0 : i32
    %c0_i32_1 = arith.constant 0 : i32
    return %arg0, %c0_i32, %c0_i32_0 : i32, i32, i32
  }
  func.func @transform_5(%arg0: i32, %arg1: i32) -> (i32, i32, i32) {
    %c0_i32 = arith.constant 0 : i32
    %c0_i32_0 = arith.constant 0 : i32
    %c0_i32_1 = arith.constant 0 : i32
    return %arg0, %c0_i32, %c0_i32_0 : i32, i32, i32
  }
  func.func @transform_6(%arg0: i32, %arg1: i32) -> (i32, i32, i32) {
    %c0_i32 = arith.constant 0 : i32
    %c0_i32_0 = arith.constant 0 : i32
    %c0_i32_1 = arith.constant 0 : i32
    return %arg0, %c0_i32, %c0_i32_0 : i32, i32, i32
  }
  func.func @transform_7(%arg0: i32, %arg1: i32) -> (i32, i32, i32) {
    %c0_i32 = arith.constant 0 : i32
    %c0_i32_0 = arith.constant 0 : i32
    %c0_i32_1 = arith.constant 0 : i32
    return %arg0, %c0_i32, %c0_i32_0 : i32, i32, i32
  }
  func.func @transform_8(%arg0: i32, %arg1: i32) -> (i32, i32, i32) {
    %c0_i32 = arith.constant 0 : i32
    %c0_i32_0 = arith.constant 0 : i32
    %c0_i32_1 = arith.constant 0 : i32
    return %arg0, %c0_i32, %c0_i32_0 : i32, i32, i32
  }
  func.func @transform_9(%arg0: i32, %arg1: i32) -> (i32, i32, i32) {
    %c0_i32 = arith.constant 0 : i32
    %c0_i32_0 = arith.constant 0 : i32
    return %arg0, %arg1, %c0_i32 : i32, i32, i32
  }
}

</mosaic_0001>

<bundles_post_ra>
// kernel: tpu_custom_call.1
= control target key start
LH: loop header
LB: loop body
LE: loop exit
PB: predicated region body
PF: predicated region fallthrough
CT: control target
= control target key end

     0   :  { %14 = vsyncpa [#allocation3], 0  ;;  %s878_s0 = inlined_call_operand.hbm [shape: f32[8,16], index: 0, kind: input, shape index: {}]   ;;  %s879_s1 = inlined_call_operand.vmem [shape: f32[8,4], index: 1, kind: input, shape index: {}]   ;;  %s880_s2 = inlined_call_operand.vmem [shape: f32[1,16,128], index: 2, kind: input, shape index: {}]   ;;  %s881_s3 = inlined_call_operand.vmem [shape: f32[1,4,128], index: 3, kind: input, shape index: {}]   ;;  %s882_s4 = inlined_call_operand.vmem [shape: f32[1,1,128], index: 4, kind: input, shape index: {}]   ;;  %s883_s5 = inlined_call_operand.hbm [shape: f32[1,128,128], index: 5, kind: input, shape index: {}]   ;;  %s884_s6 = inlined_call_operand.vmem [shape: f32[1,1,128], index: 6, kind: input, shape index: {}]   ;;  %s885_s7 = inlined_call_operand.hbm [shape: f32[1,128,128], index: 7, kind: input, shape index: {}]   ;;  %s886_s8 = inlined_call_operand.vmem [shape: f32[1,1,128], index: 8, kind: input, shape index: {}]   ;;  %s887_s9 = inlined_call_operand.hbm [shape: f32[1,8,128], index: 9, kind: output, shape index: {}]  }
   0x1   :  { %15 = vsyncpa [#allocation6], 0 }
   0x2   :  { %16 = vsyncpa [#allocation4], 0  ;;  %s723_s30 = smov [#allocation5]   ;;  %s629_s13 = scalar_lea.hbm %s883_s5, 2048 }
   0x3   :  { %s40_s10 = sshll.u32 %s723_s30, 4  ;;  %p630_p0 = scmp.ne.s32.totalorder %s883_s5, %s629_s13  ;;  %s41_s10 = int_to_ptr.vmem [resolvable:$true] %s40_s10 }
   0x4   :  { %p633_p1 = scmp.lt.u32.totalorder %s629_s13, %s883_s5 }
   0x6   :  { %p635_p2 = pnand %p633_p1, %p630_p0 }
   0x8   :  { %638 = shalt.err (!%p635_p2)
}
   0x9   :  { %s639_s18 = scalar_lea.vmem %s41_s10, 2048  ;;  %p644_p4 = scmp.lt.s32.totalorder %s41_s10, %s41_s10 }
   0xa   :  { %p640_p3 = scmp.ne.s32.totalorder %s41_s10, %s639_s18  ;;  %p645_p5 = scmp.lt.s32.totalorder %s639_s18, %s639_s18 }
   0xc   :  { %p646_p6 = por %p645_p5, %p644_p4 }
   0xe   :  { %p647_p7 = pnand %p646_p6, %p640_p3 }
  0x10   :  { %650 = shalt.err (!%p647_p7)
}
  0x11   :  { %s724_s19 = smov 128   ;;  %s725_s20 = smov 8  }
  0x12   :  { %46 = dma.hbm_to_vmem [thread:$0]  %s883_s5, 2048, %s41_s10, [#allocation6], %s724_s19, %s724_s19, %s725_s20  }
  0x13   :  { %s726_s23 = smov [#allocation2]   ;;  %s727_s25 = smov [#allocation7]  }
  0x14   :  { %s23_s24 = sshll.u32 %s726_s23, 4  ;;  %s54_s26 = sshll.u32 %s727_s25, 4  ;;  %s24_s24 = int_to_ptr.vmem [resolvable:$true] %s23_s24  ;;  %s55_s26 = int_to_ptr.vmem [resolvable:$true] %s54_s26 }
  0x15   :  { %s651_s29 = scalar_lea.hbm %s878_s0, 128 }
  0x16   :  { %p652_p8 = scmp.ne.s32.totalorder %s878_s0, %s651_s29  ;;  %p655_p9 = scmp.lt.u32.totalorder %s651_s29, %s878_s0 }
  0x18   :  { %p657_p10 = pnand %p655_p9, %p652_p8 }
  0x1a   :  { %660 = shalt.err (!%p657_p10)
}
  0x1b   :  { %s661_s5 = scalar_lea.vmem %s24_s24, 128  ;;  %p666_p12 = scmp.lt.s32.totalorder %s24_s24, %s24_s24 }
  0x1c   :  { %p662_p11 = scmp.ne.s32.totalorder %s24_s24, %s661_s5  ;;  %p667_p13 = scmp.lt.s32.totalorder %s661_s5, %s661_s5 }
  0x1e   :  { %p668_p0 = por %p667_p13, %p666_p12 }
  0x20   :  { %p669_p1 = pnand %p668_p0, %p662_p11 }
  0x22   :  { %672 = shalt.err (!%p669_p1)
}
  0x23   :  { %26 = dma.hbm_to_vmem [thread:$0]  %s878_s0, 128, %s24_s24, [#allocation3]  }
  0x24   :  { %s673_s17 = scalar_lea.hbm %s885_s7, 2048 }
  0x25   :  { %p674_p2 = scmp.ne.s32.totalorder %s885_s7, %s673_s17  ;;  %p677_p3 = scmp.lt.u32.totalorder %s673_s17, %s885_s7 }
  0x27   :  { %p679_p4 = pnand %p677_p3, %p674_p2 }
  0x29   :  { %682 = shalt.err (!%p679_p4)
}
  0x2a   :  { %s683_s25 = scalar_lea.vmem %s55_s26, 2048  ;;  %p688_p6 = scmp.lt.s32.totalorder %s55_s26, %s55_s26 }
  0x2b   :  { %p684_p5 = scmp.ne.s32.totalorder %s55_s26, %s683_s25  ;;  %p689_p7 = scmp.lt.s32.totalorder %s683_s25, %s683_s25 }
  0x2d   :  { %p690_p8 = por %p689_p7, %p688_p6 }
  0x2f   :  { %p691_p9 = pnand %p690_p8, %p684_p5 }
  0x31   :  { %694 = shalt.err (!%p691_p9)
}
  0x32   :  { %60 = dma.hbm_to_vmem [thread:$0]  %s885_s7, 2048, %s55_s26, [#allocation6], %s724_s19, %s724_s19, %s725_s20  }
  0x33   :  { %717 = dma.done.wait [#allocation3], 128  }
  0x34   :  { %718 = vsyncadd [#allocation3], 4294967168 }
  0x35   :  { %719 = dma.done.wait [#allocation6], 4096  }
  0x36   :  { %720 = vsyncadd [#allocation6], 4294963200  ;;  %v728_v0 = vmov 0.0|0.0   ;;  %v729_v1 = vmov 0.0   ;;  %vm730_vm0 = vmmov 0   ;;  %vm81_vm1 = vcmask 1043456  }
  0x37   :  { %569 = vmatprep.subr.bf16.mxu1 %v728_v0  ;;  %487 = vmatprep.subr.mxu0 %v729_v1  ;;  %vm77_vm2 = vcmask 31744   ;;  %v74_v2 = vld [vmem:[%s880_s2] sm:$0xff]  ;;  %v75_v3 = vld [vmem:[%s880_s2 + $0x8] sm:$0xff]  ;;  %v239_v8 = vld [vmem:[#allocation5 + $0x8] sm:$0xff]  ;;  %vm155_vm3 = vcmask 130048   ;;  %s731_s13 = smov [#allocation8]  }
  0x38   :  { %489 = vmatprep.mubr.msk.f32.mxu0 %vm730_vm0, %v729_v1  ;;  %496 = vmatprep.mubr.msk.f32.mxu1 %vm730_vm0, %v729_v1  ;;  %v76_v4 = vld [vmem:[%s881_s3] sm:$0xf]  ;;  %v570_v5 = vpack.c.bf16 %v75_v3, %v74_v2  ;;  %v238_v7 = vld [vmem:[#allocation5] sm:$0xff]  ;;  %v240_v9 = vld [vmem:[#allocation5 + $0x10] sm:$0xff]  ;;  %s432_s5 = sshll.u32 %s731_s13, 4  ;;  %s433_s5 = int_to_ptr.vmem [resolvable:$true] %s432_s5 }
  0x39   :  { %488 = vmatpush3.msk.msra.mxu0 %vm81_vm1, %v76_v4  ;;  %v73_v6 = vld [vmem:[%s879_s1] sm:$0xff]  ;;  %v573_v12 = vpack.c.bf16 %v239_v8, %v238_v7  ;;  %v242_v14 = vld [vmem:[#allocation5 + $0x20] sm:$0xff]  ;;  %v243_v15 = vld [vmem:[#allocation5 + $0x28] sm:$0xff]  ;;  %s695_s10 = scalar_lea.vmem %s433_s5, 128  ;;  %p700_p11 = scmp.lt.s32.totalorder %s433_s5, %s433_s5 }
  0x3a   :  { %490 = vmatmul.mubr.msk.f32.vlgmr.msra.gmra.mrb[0].mxu0 %vm77_vm2, %v73_v6  ;;  %572 = vmatprep.subr.bf16.mxu0 %v728_v0  ;;  %v241_v10 = vld [vmem:[#allocation5 + $0x18] sm:$0xff]  ;;  %v579_v16 = vpack.c.bf16 %v243_v15, %v242_v14  ;;  %v244_v17 = vld [vmem:[#allocation5 + $0x30] sm:$0xff]  ;;  %v246_v20 = vld [vmem:[#allocation5 + $0x40] sm:$0xff]  ;;  %p696_p10 = scmp.ne.s32.totalorder %s433_s5, %s695_s10  ;;  %p701_p12 = scmp.lt.s32.totalorder %s695_s10, %s695_s10 }
  0x3b   :  { %571 = vmatpush3.bf16.msra.mxu1 %v570_v5  ;;  %v72_v11 = vld [vmem:[#allocation2] sm:$0xff]  ;;  %531 = vmatprep.mubr.msk.f32.mxu0 %vm730_vm0, %v729_v1  ;;  %v576_v13 = vpack.c.bf16 %v241_v10, %v240_v9  ;;  %v247_v21 = vld [vmem:[#allocation5 + $0x48] sm:$0xff]  ;;  %v248_v23 = vld [vmem:[#allocation5 + $0x50] sm:$0xff] }
  0x3c   :  { %596 = vmatprep.subr.bf16.mxu1 %v728_v0  ;;  %574 = vmatpush3.bf16.msra.mxu0 %v573_v12  ;;  %v245_v18 = vld [vmem:[#allocation5 + $0x38] sm:$0xff]  ;;  %v585_v22 = vpack.c.bf16 %v247_v21, %v246_v20  ;;  %v250_v26 = vld [vmem:[#allocation5 + $0x60] sm:$0xff]  ;;  %v251_v27 = vld [vmem:[#allocation5 + $0x68] sm:$0xff]  ;;  %p702_p13 = por %p701_p12, %p700_p11 }
  0x3d   :  { %575 = vmatprep.subr.bf16.mxu0 %v728_v0  ;;  %v582_v19 = vpack.c.bf16 %v245_v18, %v244_v17  ;;  %v249_v24 = vld [vmem:[#allocation5 + $0x58] sm:$0xff]  ;;  %v591_v28 = vpack.c.bf16 %v251_v27, %v250_v26  ;;  %v252_v29 = vld [vmem:[#allocation5 + $0x70] sm:$0xff]  ;;  %v332_v32 = vld [vmem:[#allocation7] sm:$0xff] }
  0x3e   :  { %497 = vmatmul.mubr.msk.f32.vlgmr.msra.gmra.mrb[0].mxu1 %vm155_vm3, %v72_v11  ;;  %v588_v25 = vpack.c.bf16 %v249_v24, %v248_v23  ;;  %v253_v30 = vld [vmem:[#allocation5 + $0x78] sm:$0xff]  ;;  %v333_v33 = vld [vmem:[#allocation7 + $0x8] sm:$0xff]  ;;  %v334_v34 = vld [vmem:[#allocation7 + $0x10] sm:$0xff]  ;;  %p703_p0 = pnand %p702_p13, %p696_p10 }
  0x3f   :  { %566 = vmatprep.mubr.msk.f32.mxu1 %vm730_vm0, %v729_v1  ;;  %v594_v31 = vpack.c.bf16 %v253_v30, %v252_v29  ;;  %v597_v35 = vpack.c.bf16 %v333_v33, %v332_v32  ;;  %v335_v36 = vld [vmem:[#allocation7 + $0x18] sm:$0xff]  ;;  %v336_v38 = vld [vmem:[#allocation7 + $0x20] sm:$0xff]  ;;  %v337_v39 = vld [vmem:[#allocation7 + $0x28] sm:$0xff] }
  0x40   :  { %577 = vmatpush3.bf16.msra.mxu0 %v576_v13  ;;  %v600_v37 = vpack.c.bf16 %v335_v36, %v334_v34  ;;  %v603_v40 = vpack.c.bf16 %v337_v39, %v336_v38  ;;  %v338_v41 = vld [vmem:[#allocation7 + $0x30] sm:$0xff]  ;;  %v339_v42 = vld [vmem:[#allocation7 + $0x38] sm:$0xff]  ;;  %v340_v44 = vld [vmem:[#allocation7 + $0x40] sm:$0xff] }
  0x41   :  { %578 = vmatprep.subr.bf16.mxu0 %v728_v0  ;;  %598 = vmatpush3.bf16.msra.mxu1 %v597_v35  ;;  %v606_v43 = vpack.c.bf16 %v339_v42, %v338_v41  ;;  %v341_v45 = vld [vmem:[#allocation7 + $0x48] sm:$0xff]  ;;  %v342_v47 = vld [vmem:[#allocation7 + $0x50] sm:$0xff]  ;;  %v343_v48 = vld [vmem:[#allocation7 + $0x58] sm:$0xff] }
  0x42   :  { %599 = vmatprep.subr.bf16.mxu1 %v728_v0  ;;  %v609_v46 = vpack.c.bf16 %v341_v45, %v340_v44  ;;  %v612_v49 = vpack.c.bf16 %v343_v48, %v342_v47  ;;  %v344_v50 = vld [vmem:[#allocation7 + $0x60] sm:$0xff]  ;;  %v345_v51 = vld [vmem:[#allocation7 + $0x68] sm:$0xff]  ;;  %v445_v56 = vld [vmem:[%s882_s4] ss:$0 sm:$0xff] }
  0x43   :  { %v615_v52 = vpack.c.bf16 %v345_v51, %v344_v50  ;;  %v346_v61 = vld [vmem:[#allocation7 + $0x70] sm:$0xff]  ;;  %v347_v62 = vld [vmem:[#allocation7 + $0x78] sm:$0xff] }
  0x44   :  { %580 = vmatpush3.bf16.msra.mxu0 %v579_v16  ;;  %v618_v63 = vpack.c.bf16 %v347_v62, %v346_v61  ;;  %v447_v5 = vld [vmem:[%s886_s8] ss:$0 sm:$0xff] }
  0x45   :  { %581 = vmatprep.subr.bf16.mxu0 %v728_v0  ;;  %601 = vmatpush3.bf16.msra.mxu1 %v600_v37 }
  0x46   :  { %602 = vmatprep.subr.bf16.mxu1 %v728_v0 }
  0x48   :  { %583 = vmatpush3.bf16.msra.mxu0 %v582_v19 }
  0x49   :  { %584 = vmatprep.subr.bf16.mxu0 %v728_v0  ;;  %604 = vmatpush3.bf16.msra.mxu1 %v603_v40 }
  0x4a   :  { %605 = vmatprep.subr.bf16.mxu1 %v728_v0 }
  0x4c   :  { %586 = vmatpush3.bf16.msra.mxu0 %v585_v22 }
  0x4d   :  { %587 = vmatprep.subr.bf16.mxu0 %v728_v0  ;;  %607 = vmatpush3.bf16.msra.mxu1 %v606_v43 }
  0x4e   :  { %608 = vmatprep.subr.bf16.mxu1 %v728_v0 }
  0x50   :  { %589 = vmatpush3.bf16.msra.mxu0 %v588_v25 }
  0x51   :  { %590 = vmatprep.subr.bf16.mxu0 %v728_v0  ;;  %610 = vmatpush3.bf16.msra.mxu1 %v609_v46 }
  0x52   :  { %611 = vmatprep.subr.bf16.mxu1 %v728_v0 }
  0x54   :  { %592 = vmatpush3.bf16.msra.mxu0 %v591_v28 }
  0x55   :  { %593 = vmatprep.subr.bf16.mxu0 %v728_v0  ;;  %613 = vmatpush3.bf16.msra.mxu1 %v612_v49 }
  0x56   :  { %614 = vmatprep.subr.bf16.mxu1 %v728_v0 }
  0x58   :  { %595 = vmatpush3.bf16.msra.mxu0 %v594_v31 }
  0x59   :  { %616 = vmatpush3.bf16.msra.mxu1 %v615_v52 }
  0x5a   :  { %617 = vmatprep.subr.bf16.mxu1 %v728_v0  ;;  %v446_v0 = vld [vmem:[%s884_s6] ss:$0 sm:$0xff] }
  0x5d   :  { %619 = vmatpush3.bf16.msra.mxu1 %v618_v63 }
 0x10d   :  { %v151_v53 = vpop.f32.mrb[0].mxu0 }
 0x10e   :  { %v491_v54 = vpop.f32.mrb[1].mxu0 }
 0x111   :  { %v225_v55 = vpop.f32.mrb[0].mxu1 }
 0x112   :  { %v226_v57 = vadd.f32 %v225_v55, %v151_v53  ;;  %v498_v58 = vpop.f32.mrb[1].mxu1 }
 0x114   :  { %v236_v59 = vadd.f32 %v445_v56, %v226_v57 }
 0x116   :  { %v237_v60 = vmax.f32 %v236_v59, 0.0 }
 0x118   :  { %532 = vmatmul.mubr.f32.vlgmr.msra.gmra.mrb[2].mxu0 %v237_v60 }
 0x1eb   :  { %v327_v1 = vpop.f32.mrb[2].mxu0 }
 0x1ec   :  { %v328_v2 = vadd.f32 %v446_v0, %v327_v1  ;;  %v533_v3 = vpop.f32.mrb[3].mxu0 }
 0x1ee   :  { %v331_v4 = vmax.f32 %v328_v2, 0.0 }
 0x1f0   :  { %567 = vmatmul.mubr.f32.vlgmr.msra.gmra.mrb[2].mxu1 %v331_v4 }
 0x2c3   :  { %v421_v6 = vpop.f32.mrb[2].mxu1 }
 0x2c4   :  { %v422_v7 = vadd.f32 %v447_v5, %v421_v6  ;;  %v568_v8 = vpop.f32.mrb[3].mxu1 }
 0x2c6   :  { %425 = vst [vmem:[#allocation8] sm:$0xff] %v422_v7 }
 0x2c7   :  { %706 = shalt.err (!%p703_p0)
}
 0x2c8   :  { %s707_s15 = scalar_lea.hbm %s887_s9, 128 }
 0x2c9   :  { %p708_p1 = scmp.ne.s32.totalorder %s887_s9, %s707_s15  ;;  %p711_p2 = scmp.lt.u32.totalorder %s707_s15, %s887_s9 }
 0x2cb   :  { %p713_p3 = pnand %p711_p2, %p708_p1 }
 0x2cd   :  { %716 = shalt.err (!%p713_p3)
}
 0x2ce   :  { %435 = dma.vmem_to_hbm [thread:$0]  %s433_s5, 128, %s887_s9, [#allocation4]  }
 0x2cf   :  { %721 = dma.done.wait [#allocation4], 128  }
 0x2d0   :  { %722 = vsyncadd [#allocation4], 4294967168 }
 0x2d1   :  { %439 = vsyncpa [#allocation3], 1 }
 0x2d2   :  { %440 = vsyncpa [#allocation6], 1 }
 0x2d3   :  { %441 = vsyncpa [#allocation4], 1 }

// kernel: tpu_custom_call.1
= control target key start
LH: loop header
LB: loop body
LE: loop exit
PB: predicated region body
PF: predicated region fallthrough
CT: control target
= control target key end

     0   :  { %14 = vsyncpa [#allocation3], 0  ;;  %s878_s0 = inlined_call_operand.hbm [shape: f32[8,16], index: 0, kind: input, shape index: {}]   ;;  %s879_s1 = inlined_call_operand.vmem [shape: f32[8,4], index: 1, kind: input, shape index: {}]   ;;  %s880_s2 = inlined_call_operand.vmem [shape: f32[1,16,128], index: 2, kind: input, shape index: {}]   ;;  %s881_s3 = inlined_call_operand.vmem [shape: f32[1,4,128], index: 3, kind: input, shape index: {}]   ;;  %s882_s4 = inlined_call_operand.vmem [shape: f32[1,1,128], index: 4, kind: input, shape index: {}]   ;;  %s883_s5 = inlined_call_operand.hbm [shape: f32[1,128,128], index: 5, kind: input, shape index: {}]   ;;  %s884_s6 = inlined_call_operand.vmem [shape: f32[1,1,128], index: 6, kind: input, shape index: {}]   ;;  %s885_s7 = inlined_call_operand.hbm [shape: f32[1,128,128], index: 7, kind: input, shape index: {}]   ;;  %s886_s8 = inlined_call_operand.vmem [shape: f32[1,1,128], index: 8, kind: input, shape index: {}]   ;;  %s887_s9 = inlined_call_operand.hbm [shape: f32[1,8,128], index: 9, kind: output, shape index: {}]  }
   0x1   :  { %15 = vsyncpa [#allocation6], 0 }
   0x2   :  { %16 = vsyncpa [#allocation4], 0  ;;  %s723_s30 = smov [#allocation5]   ;;  %s629_s13 = scalar_lea.hbm %s883_s5, 2048 }
   0x3   :  { %s40_s10 = sshll.u32 %s723_s30, 4  ;;  %p630_p0 = scmp.ne.s32.totalorder %s883_s5, %s629_s13  ;;  %s41_s10 = int_to_ptr.vmem [resolvable:$true] %s40_s10 }
   0x4   :  { %p633_p1 = scmp.lt.u32.totalorder %s629_s13, %s883_s5 }
   0x6   :  { %p635_p2 = pnand %p633_p1, %p630_p0 }
   0x8   :  { %638 = shalt.err (!%p635_p2)
}
   0x9   :  { %s639_s18 = scalar_lea.vmem %s41_s10, 2048  ;;  %p644_p4 = scmp.lt.s32.totalorder %s41_s10, %s41_s10 }
   0xa   :  { %p640_p3 = scmp.ne.s32.totalorder %s41_s10, %s639_s18  ;;  %p645_p5 = scmp.lt.s32.totalorder %s639_s18, %s639_s18 }
   0xc   :  { %p646_p6 = por %p645_p5, %p644_p4 }
   0xe   :  { %p647_p7 = pnand %p646_p6, %p640_p3 }
  0x10   :  { %650 = shalt.err (!%p647_p7)
}
  0x11   :  { %s724_s19 = smov 128   ;;  %s725_s20 = smov 8  }
  0x12   :  { %46 = dma.hbm_to_vmem [thread:$0]  %s883_s5, 2048, %s41_s10, [#allocation6], %s724_s19, %s724_s19, %s725_s20  }
  0x13   :  { %s726_s23 = smov [#allocation2]   ;;  %s727_s25 = smov [#allocation7]  }
  0x14   :  { %s23_s24 = sshll.u32 %s726_s23, 4  ;;  %s54_s26 = sshll.u32 %s727_s25, 4  ;;  %s24_s24 = int_to_ptr.vmem [resolvable:$true] %s23_s24  ;;  %s55_s26 = int_to_ptr.vmem [resolvable:$true] %s54_s26 }
  0x15   :  { %s651_s29 = scalar_lea.hbm %s878_s0, 128 }
  0x16   :  { %p652_p8 = scmp.ne.s32.totalorder %s878_s0, %s651_s29  ;;  %p655_p9 = scmp.lt.u32.totalorder %s651_s29, %s878_s0 }
  0x18   :  { %p657_p10 = pnand %p655_p9, %p652_p8 }
  0x1a   :  { %660 = shalt.err (!%p657_p10)
}
  0x1b   :  { %s661_s5 = scalar_lea.vmem %s24_s24, 128  ;;  %p666_p12 = scmp.lt.s32.totalorder %s24_s24, %s24_s24 }
  0x1c   :  { %p662_p11 = scmp.ne.s32.totalorder %s24_s24, %s661_s5  ;;  %p667_p13 = scmp.lt.s32.totalorder %s661_s5, %s661_s5 }
  0x1e   :  { %p668_p0 = por %p667_p13, %p666_p12 }
  0x20   :  { %p669_p1 = pnand %p668_p0, %p662_p11 }
  0x22   :  { %672 = shalt.err (!%p669_p1)
}
  0x23   :  { %26 = dma.hbm_to_vmem [thread:$0]  %s878_s0, 128, %s24_s24, [#allocation3]  }
  0x24   :  { %s673_s17 = scalar_lea.hbm %s885_s7, 2048 }
  0x25   :  { %p674_p2 = scmp.ne.s32.totalorder %s885_s7, %s673_s17  ;;  %p677_p3 = scmp.lt.u32.totalorder %s673_s17, %s885_s7 }
  0x27   :  { %p679_p4 = pnand %p677_p3, %p674_p2 }
  0x29   :  { %682 = shalt.err (!%p679_p4)
}
  0x2a   :  { %s683_s25 = scalar_lea.vmem %s55_s26, 2048  ;;  %p688_p6 = scmp.lt.s32.totalorder %s55_s26, %s55_s26 }
  0x2b   :  { %p684_p5 = scmp.ne.s32.totalorder %s55_s26, %s683_s25  ;;  %p689_p7 = scmp.lt.s32.totalorder %s683_s25, %s683_s25 }
  0x2d   :  { %p690_p8 = por %p689_p7, %p688_p6 }
  0x2f   :  { %p691_p9 = pnand %p690_p8, %p684_p5 }
  0x31   :  { %694 = shalt.err (!%p691_p9)
}
  0x32   :  { %60 = dma.hbm_to_vmem [thread:$0]  %s885_s7, 2048, %s55_s26, [#allocation6], %s724_s19, %s724_s19, %s725_s20  }
  0x33   :  { %717 = dma.done.wait [#allocation3], 128  }
  0x34   :  { %718 = vsyncadd [#allocation3], 4294967168 }
  0x35   :  { %719 = dma.done.wait [#allocation6], 4096  }
  0x36   :  { %720 = vsyncadd [#allocation6], 4294963200  ;;  %v728_v0 = vmov 0.0|0.0   ;;  %v729_v1 = vmov 0.0   ;;  %vm730_vm0 = vmmov 0   ;;  %vm81_vm1 = vcmask 1043456  }
  0x37   :  { %569 = vmatprep.subr.bf16.mxu1 %v728_v0  ;;  %487 = vmatprep.subr.mxu0 %v729_v1  ;;  %vm77_vm2 = vcmask 31744   ;;  %v74_v2 = vld [vmem:[%s880_s2] sm:$0xff]  ;;  %v75_v3 = vld [vmem:[%s880_s2 + $0x8] sm:$0xff]  ;;  %v239_v8 = vld [vmem:[#allocation5 + $0x8] sm:$0xff]  ;;  %vm155_vm3 = vcmask 130048   ;;  %s731_s13 = smov [#allocation8]  }
  0x38   :  { %489 = vmatprep.mubr.msk.f32.mxu0 %vm730_vm0, %v729_v1  ;;  %496 = vmatprep.mubr.msk.f32.mxu1 %vm730_vm0, %v729_v1  ;;  %v76_v4 = vld [vmem:[%s881_s3] sm:$0xf]  ;;  %v570_v5 = vpack.c.bf16 %v75_v3, %v74_v2  ;;  %v238_v7 = vld [vmem:[#allocation5] sm:$0xff]  ;;  %v240_v9 = vld [vmem:[#allocation5 + $0x10] sm:$0xff]  ;;  %s432_s5 = sshll.u32 %s731_s13, 4  ;;  %s433_s5 = int_to_ptr.vmem [resolvable:$true] %s432_s5 }
  0x39   :  { %488 = vmatpush3.msk.msra.mxu0 %vm81_vm1, %v76_v4  ;;  %v73_v6 = vld [vmem:[%s879_s1] sm:$0xff]  ;;  %v573_v12 = vpack.c.bf16 %v239_v8, %v238_v7  ;;  %v242_v14 = vld [vmem:[#allocation5 + $0x20] sm:$0xff]  ;;  %v243_v15 = vld [vmem:[#allocation5 + $0x28] sm:$0xff]  ;;  %s695_s10 = scalar_lea.vmem %s433_s5, 128  ;;  %p700_p11 = scmp.lt.s32.totalorder %s433_s5, %s433_s5 }
  0x3a   :  { %490 = vmatmul.mubr.msk.f32.vlgmr.msra.gmra.mrb[0].mxu0 %vm77_vm2, %v73_v6  ;;  %572 = vmatprep.subr.bf16.mxu0 %v728_v0  ;;  %v241_v10 = vld [vmem:[#allocation5 + $0x18] sm:$0xff]  ;;  %v579_v16 = vpack.c.bf16 %v243_v15, %v242_v14  ;;  %v244_v17 = vld [vmem:[#allocation5 + $0x30] sm:$0xff]  ;;  %v246_v20 = vld [vmem:[#allocation5 + $0x40] sm:$0xff]  ;;  %p696_p10 = scmp.ne.s32.totalorder %s433_s5, %s695_s10  ;;  %p701_p12 = scmp.lt.s32.totalorder %s695_s10, %s695_s10 }
  0x3b   :  { %571 = vmatpush3.bf16.msra.mxu1 %v570_v5  ;;  %v72_v11 = vld [vmem:[#allocation2] sm:$0xff]  ;;  %531 = vmatprep.mubr.msk.f32.mxu0 %vm730_vm0, %v729_v1  ;;  %v576_v13 = vpack.c.bf16 %v241_v10, %v240_v9  ;;  %v247_v21 = vld [vmem:[#allocation5 + $0x48] sm:$0xff]  ;;  %v248_v23 = vld [vmem:[#allocation5 + $0x50] sm:$0xff] }
  0x3c   :  { %596 = vmatprep.subr.bf16.mxu1 %v728_v0  ;;  %574 = vmatpush3.bf16.msra.mxu0 %v573_v12  ;;  %v245_v18 = vld [vmem:[#allocation5 + $0x38] sm:$0xff]  ;;  %v585_v22 = vpack.c.bf16 %v247_v21, %v246_v20  ;;  %v250_v26 = vld [vmem:[#allocation5 + $0x60] sm:$0xff]  ;;  %v251_v27 = vld [vmem:[#allocation5 + $0x68] sm:$0xff]  ;;  %p702_p13 = por %p701_p12, %p700_p11 }
  0x3d   :  { %575 = vmatprep.subr.bf16.mxu0 %v728_v0  ;;  %v582_v19 = vpack.c.bf16 %v245_v18, %v244_v17  ;;  %v249_v24 = vld [vmem:[#allocation5 + $0x58] sm:$0xff]  ;;  %v591_v28 = vpack.c.bf16 %v251_v27, %v250_v26  ;;  %v252_v29 = vld [vmem:[#allocation5 + $0x70] sm:$0xff]  ;;  %v332_v32 = vld [vmem:[#allocation7] sm:$0xff] }
  0x3e   :  { %497 = vmatmul.mubr.msk.f32.vlgmr.msra.gmra.mrb[0].mxu1 %vm155_vm3, %v72_v11  ;;  %v588_v25 = vpack.c.bf16 %v249_v24, %v248_v23  ;;  %v253_v30 = vld [vmem:[#allocation5 + $0x78] sm:$0xff]  ;;  %v333_v33 = vld [vmem:[#allocation7 + $0x8] sm:$0xff]  ;;  %v334_v34 = vld [vmem:[#allocation7 + $0x10] sm:$0xff]  ;;  %p703_p0 = pnand %p702_p13, %p696_p10 }
  0x3f   :  { %566 = vmatprep.mubr.msk.f32.mxu1 %vm730_vm0, %v729_v1  ;;  %v594_v31 = vpack.c.bf16 %v253_v30, %v252_v29  ;;  %v597_v35 = vpack.c.bf16 %v333_v33, %v332_v32  ;;  %v335_v36 = vld [vmem:[#allocation7 + $0x18] sm:$0xff]  ;;  %v336_v38 = vld [vmem:[#allocation7 + $0x20] sm:$0xff]  ;;  %v337_v39 = vld [vmem:[#allocation7 + $0x28] sm:$0xff] }
  0x40   :  { %577 = vmatpush3.bf16.msra.mxu0 %v576_v13  ;;  %v600_v37 = vpack.c.bf16 %v335_v36, %v334_v34  ;;  %v603_v40 = vpack.c.bf16 %v337_v39, %v336_v38  ;;  %v338_v41 = vld [vmem:[#allocation7 + $0x30] sm:$0xff]  ;;  %v339_v42 = vld [vmem:[#allocation7 + $0x38] sm:$0xff]  ;;  %v340_v44 = vld [vmem:[#allocation7 + $0x40] sm:$0xff] }
  0x41   :  { %578 = vmatprep.subr.bf16.mxu0 %v728_v0  ;;  %598 = vmatpush3.bf16.msra.mxu1 %v597_v35  ;;  %v606_v43 = vpack.c.bf16 %v339_v42, %v338_v41  ;;  %v341_v45 = vld [vmem:[#allocation7 + $0x48] sm:$0xff]  ;;  %v342_v47 = vld [vmem:[#allocation7 + $0x50] sm:$0xff]  ;;  %v343_v48 = vld [vmem:[#allocation7 + $0x58] sm:$0xff] }
  0x42   :  { %599 = vmatprep.subr.bf16.mxu1 %v728_v0  ;;  %v609_v46 = vpack.c.bf16 %v341_v45, %v340_v44  ;;  %v612_v49 = vpack.c.bf16 %v343_v48, %v342_v47  ;;  %v344_v50 = vld [vmem:[#allocation7 + $0x60] sm:$0xff]  ;;  %v345_v51 = vld [vmem:[#allocation7 + $0x68] sm:$0xff]  ;;  %v445_v56 = vld [vmem:[%s882_s4] ss:$0 sm:$0xff] }
  0x43   :  { %v615_v52 = vpack.c.bf16 %v345_v51, %v344_v50  ;;  %v346_v61 = vld [vmem:[#allocation7 + $0x70] sm:$0xff]  ;;  %v347_v62 = vld [vmem:[#allocation7 + $0x78] sm:$0xff] }
  0x44   :  { %580 = vmatpush3.bf16.msra.mxu0 %v579_v16  ;;  %v618_v63 = vpack.c.bf16 %v347_v62, %v346_v61  ;;  %v447_v5 = vld [vmem:[%s886_s8] ss:$0 sm:$0xff] }
  0x45   :  { %581 = vmatprep.subr.bf16.mxu0 %v728_v0  ;;  %601 = vmatpush3.bf16.msra.mxu1 %v600_v37 }
  0x46   :  { %602 = vmatprep.subr.bf16.mxu1 %v728_v0 }
  0x48   :  { %583 = vmatpush3.bf16.msra.mxu0 %v582_v19 }
  0x49   :  { %584 = vmatprep.subr.bf16.mxu0 %v728_v0  ;;  %604 = vmatpush3.bf16.msra.mxu1 %v603_v40 }
  0x4a   :  { %605 = vmatprep.subr.bf16.mxu1 %v728_v0 }
  0x4c   :  { %586 = vmatpush3.bf16.msra.mxu0 %v585_v22 }
  0x4d   :  { %587 = vmatprep.subr.bf16.mxu0 %v728_v0  ;;  %607 = vmatpush3.bf16.msra.mxu1 %v606_v43 }
  0x4e   :  { %608 = vmatprep.subr.bf16.mxu1 %v728_v0 }
  0x50   :  { %589 = vmatpush3.bf16.msra.mxu0 %v588_v25 }
  0x51   :  { %590 = vmatprep.subr.bf16.mxu0 %v728_v0  ;;  %610 = vmatpush3.bf16.msra.mxu1 %v609_v46 }
  0x52   :  { %611 = vmatprep.subr.bf16.mxu1 %v728_v0 }
  0x54   :  { %592 = vmatpush3.bf16.msra.mxu0 %v591_v28 }
  0x55   :  { %593 = vmatprep.subr.bf16.mxu0 %v728_v0  ;;  %613 = vmatpush3.bf16.msra.mxu1 %v612_v49 }
  0x56   :  { %614 = vmatprep.subr.bf16.mxu1 %v728_v0 }
  0x58   :  { %595 = vmatpush3.bf16.msra.mxu0 %v594_v31 }
  0x59   :  { %616 = vmatpush3.bf16.msra.mxu1 %v615_v52 }
  0x5a   :  { %617 = vmatprep.subr.bf16.mxu1 %v728_v0  ;;  %v446_v0 = vld [vmem:[%s884_s6] ss:$0 sm:$0xff] }
  0x5d   :  { %619 = vmatpush3.bf16.msra.mxu1 %v618_v63 }
 0x10d   :  { %v151_v53 = vpop.f32.mrb[0].mxu0 }
 0x10e   :  { %v491_v54 = vpop.f32.mrb[1].mxu0 }
 0x111   :  { %v225_v55 = vpop.f32.mrb[0].mxu1 }
 0x112   :  { %v226_v57 = vadd.f32 %v225_v55, %v151_v53  ;;  %v498_v58 = vpop.f32.mrb[1].mxu1 }
 0x114   :  { %v236_v59 = vadd.f32 %v445_v56, %v226_v57 }
 0x116   :  { %v237_v60 = vmax.f32 %v236_v59, 0.0 }
 0x118   :  { %532 = vmatmul.mubr.f32.vlgmr.msra.gmra.mrb[2].mxu0 %v237_v60 }
 0x1eb   :  { %v327_v1 = vpop.f32.mrb[2].mxu0 }
 0x1ec   :  { %v328_v2 = vadd.f32 %v446_v0, %v327_v1  ;;  %v533_v3 = vpop.f32.mrb[3].mxu0 }
 0x1ee   :  { %v331_v4 = vmax.f32 %v328_v2, 0.0 }
 0x1f0   :  { %567 = vmatmul.mubr.f32.vlgmr.msra.gmra.mrb[2].mxu1 %v331_v4 }
 0x2c3   :  { %v421_v6 = vpop.f32.mrb[2].mxu1 }
 0x2c4   :  { %v422_v7 = vadd.f32 %v447_v5, %v421_v6  ;;  %v568_v8 = vpop.f32.mrb[3].mxu1 }
 0x2c6   :  { %425 = vst [vmem:[#allocation8] sm:$0xff] %v422_v7 }
 0x2c7   :  { %706 = shalt.err (!%p703_p0)
}
 0x2c8   :  { %s707_s15 = scalar_lea.hbm %s887_s9, 128 }
 0x2c9   :  { %p708_p1 = scmp.ne.s32.totalorder %s887_s9, %s707_s15  ;;  %p711_p2 = scmp.lt.u32.totalorder %s707_s15, %s887_s9 }
 0x2cb   :  { %p713_p3 = pnand %p711_p2, %p708_p1 }
 0x2cd   :  { %716 = shalt.err (!%p713_p3)
}
 0x2ce   :  { %435 = dma.vmem_to_hbm [thread:$0]  %s433_s5, 128, %s887_s9, [#allocation4]  }
 0x2cf   :  { %721 = dma.done.wait [#allocation4], 128  }
 0x2d0   :  { %722 = vsyncadd [#allocation4], 4294967168 }
 0x2d1   :  { %439 = vsyncpa [#allocation3], 1 }
 0x2d2   :  { %440 = vsyncpa [#allocation6], 1 }
 0x2d3   :  { %441 = vsyncpa [#allocation4], 1 }

</bundles_post_ra>
